<compile_context>
chip_gen: v7x
topology: tpu7x:2x2x1
jax: 0.10.0
libtpu: 0.0.40
codegen_flags: <defaults>
</compile_context>

<pallas_src>
import functools

import jax
import jax.numpy as jnp
from jax import lax
from jax.experimental import pallas as pl
from jax.experimental.pallas import tpu as pltpu

LN_EPS = 1e-5  # matches torch.nn.LayerNorm default


def _round_up(a, b):
    return (a + b - 1) // b * b


def _vmem_capacity_bytes():
    """Per-core VMEM capacity, with a conservative (v7x-sized) fallback."""
    try:
        info = pltpu.get_tpu_info()
        for name in ("vmem_capacity_bytes", "vmem_size_bytes", "vmem_bytes"):
            v = getattr(info, name, None)
            if v:
                return int(v)
    except Exception:
        pass
    return 64 * 1024 * 1024


# ---------------------------------------------------------------------------
# Pass 1: row-wise LayerNorm (mem-bound). Emits xn in the matmul dtype.
# ---------------------------------------------------------------------------
def layernorm_kernel(x_ref, gamma_ref, beta_ref, o_ref):
    x = x_ref[...].astype(jnp.float32)
    mean = jnp.mean(x, axis=-1, keepdims=True)
    # Single-pass variance: E[x^2] - mean^2 (fewer VPU passes than the two-pass form).
    var = jnp.mean(x * x, axis=-1, keepdims=True) - mean * mean
    inv = lax.rsqrt(var + LN_EPS)
    xn = (x - mean) * inv
    xn = xn * gamma_ref[...].astype(jnp.float32) + beta_ref[...].astype(jnp.float32)
    # TODO(synk): dropout is identity in eval mode; training-mode dropout not implemented.
    o_ref[...] = xn.astype(o_ref.dtype)


# ---------------------------------------------------------------------------
# Pass 2: output projection xn @ W^T + b on the MXU.
# ---------------------------------------------------------------------------
def projection_kernel(xn_ref, w_ref, bias_ref, o_ref, *, mm_dtype):
    xn = xn_ref[...]                     # already stored in mm_dtype by pass 1
    w = w_ref[...]
    if w.dtype != mm_dtype:              # static (trace-time) decision
        w = w.astype(mm_dtype)
    # Contract both operands' last (E) axis: weight stays in PyTorch [V, E] layout and
    # the MXU consumes the transposed-RHS form directly (same pattern as q @ k^T).
    logits = lax.dot_general(
        xn, w,
        dimension_numbers=(((1,), (1,)), ((), ())),
        preferred_element_type=jnp.float32,
    )
    logits = logits + bias_ref[...].astype(jnp.float32)
    o_ref[...] = logits.astype(o_ref.dtype)


@functools.partial(jax.jit, static_argnames=("tm", "tv", "tm_ln", "matmul_dtype"))
def output_head(x, gamma, beta, weight, bias, *, tm=256, tv=4096, tm_ln=1024,
                matmul_dtype=None):
    """x: [B, S, E]; weight: [V, E] (PyTorch nn.Linear layout); returns [B, S, V]."""
    B, S, E = x.shape
    V = weight.shape[0]
    M = B * S

    if matmul_dtype is None:
        # Feed the MXU bf16 when the checkpoint weight is f32 (f32 matmul decomposes
        # into several bf16 passes); accumulation stays f32 either way.
        matmul_dtype = jnp.bfloat16 if weight.dtype == jnp.float32 else weight.dtype
    mm_dtype = jnp.dtype(matmul_dtype)

    x2 = x.reshape(M, E)
    gamma2 = gamma.reshape(1, E)
    beta2 = beta.reshape(1, E)
    bias2 = bias.reshape(1, V)

    x_bytes = jnp.dtype(x.dtype).itemsize
    w_bytes = jnp.dtype(weight.dtype).itemsize
    mm_bytes = mm_dtype.itemsize
    out_bytes = jnp.dtype(x.dtype).itemsize

    # Generation-aware VMEM budget, leaving a margin for Mosaic internal scratch.
    vmem_capacity = _vmem_capacity_bytes()
    vmem_limit = max(32 * 1024 * 1024,
                     min(vmem_capacity - 16 * 1024 * 1024, 100 * 1024 * 1024))
    tile_budget = vmem_limit - 8 * 1024 * 1024

    # ------------------------- projection tile sizing -------------------------
    tm_eff = min(tm, _round_up(M, 8))
    tv_eff = min(tv, _round_up(V, 128))

    def proj_working_set(tm_, tv_):
        return (2 * tm_ * E * mm_bytes          # xn tile (double-buffered)
                + 2 * tv_ * E * w_bytes         # weight tile (double-buffered)
                + 2 * tv_ * 4                   # bias tile
                + 2 * tm_ * tv_ * out_bytes     # output tile (double-buffered)
                + tv_ * E * mm_bytes            # in-kernel weight cast temporary
                + 2 * tm_ * tv_ * 4)            # f32 accumulator / bias-add temporaries

    # Review: shrink tm first (floor at 128 rows); keep tv as large as the budget allows
    # since only tv reduces x re-read HBM traffic.  Only then shrink tv, then tm again.
    tm_floor = min(tm_eff, 128)
    while tm_eff > tm_floor and proj_working_set(tm_eff, tv_eff) > tile_budget:
        tm_eff = max(tm_floor, _round_up(tm_eff // 2, 8))
    while tv_eff > 128 and proj_working_set(tm_eff, tv_eff) > tile_budget:
        tv_eff = max(128, _round_up(tv_eff // 2, 128))
    while tm_eff > 8 and proj_working_set(tm_eff, tv_eff) > tile_budget:
        tm_eff = max(8, _round_up(tm_eff // 2, 8))
    # TODO(synk): for very large E (>= 8-16k) add a K(=E) grid axis with an f32 VMEM
    # accumulator so tv stays large inside v7x's 64 MiB VMEM.

    # -------------------------- LayerNorm tile sizing -------------------------
    tm_ln_eff = min(tm_ln, _round_up(M, 8))

    def ln_working_set(t):
        return (2 * t * E * x_bytes        # x tile (double-buffered)
                + 2 * t * E * mm_bytes     # xn tile (double-buffered)
                + 4 * t * E * 4            # f32 intermediates (x, x*x, xn, ...)
                + 4 * E * 4)               # gamma / beta

    while tm_ln_eff > 8 and ln_working_set(tm_ln_eff) > tile_budget:
        tm_ln_eff = max(8, _round_up(tm_ln_eff // 2, 8))

    # ------------------------------- Pass 1: LN -------------------------------
    xn = pl.pallas_call(
        layernorm_kernel,
        out_shape=jax.ShapeDtypeStruct((M, E), mm_dtype),
        grid_spec=pltpu.PrefetchScalarGridSpec(
            num_scalar_prefetch=0,
            grid=(pl.cdiv(M, tm_ln_eff),),
            in_specs=[
                pl.BlockSpec((tm_ln_eff, E), lambda i: (i, 0)),
                pl.BlockSpec((1, E), lambda i: (0, 0)),
                pl.BlockSpec((1, E), lambda i: (0, 0)),
            ],
            out_specs=pl.BlockSpec((tm_ln_eff, E), lambda i: (i, 0)),
        ),
        compiler_params=pltpu.CompilerParams(
            dimension_semantics=("parallel",),
            vmem_limit_bytes=vmem_limit,
        ),
    )(x2, gamma2, beta2)

    # --------------------------- Pass 2: projection ---------------------------
    # Vocab axis OUTER, rows axis INNER: the weight tile's block index depends only on
    # the outer axis, so it stays resident in VMEM across the whole inner row sweep and
    # the full [V, E] weight is read from HBM exactly once.
    grid = (pl.cdiv(V, tv_eff), pl.cdiv(M, tm_eff))

    out = pl.pallas_call(
        functools.partial(projection_kernel, mm_dtype=mm_dtype),
        out_shape=jax.ShapeDtypeStruct((M, V), x.dtype),
        grid_spec=pltpu.PrefetchScalarGridSpec(
            num_scalar_prefetch=0,
            grid=grid,
            in_specs=[
                pl.BlockSpec((tm_eff, E), lambda j, i: (i, 0)),   # xn rows
                # TODO(synk): single-buffer this spec (pipeline_mode=pl.Buffered(1))
                # once verified on the target jax build; would free tv_eff*E*w_bytes.
                pl.BlockSpec((tv_eff, E), lambda j, i: (j, 0)),   # weight [V, E]
                pl.BlockSpec((1, tv_eff), lambda j, i: (0, j)),   # bias
            ],
            out_specs=pl.BlockSpec((tm_eff, tv_eff), lambda j, i: (i, j)),
        ),
        compiler_params=pltpu.CompilerParams(
            # Independent output tiles on both axes.
            # TODO(synk): on v7x prefer CORE_PARALLEL on the vocab (outer) axis so each
            # TensorCore streams only half of W.
            dimension_semantics=("parallel", "parallel"),
            vmem_limit_bytes=vmem_limit,
        ),
    )(xn, weight, bias2)

    return out.reshape(B, S, V)


if __name__ == "__main__":
    # Small shapes implied by the forward: [batch, seq, embedding] -> [batch, seq, vocab]
    B, S, E, V = 2, 8, 32, 128

    key = jax.random.PRNGKey(0)
    kx, kw, kb, kg, kbeta = jax.random.split(key, 5)

    x = jax.random.normal(kx, (B, S, E), dtype=jnp.float32)
    gamma = jnp.ones((E,), dtype=jnp.float32) + 0.01 * jax.random.normal(kg, (E,), dtype=jnp.float32)
    beta = 0.01 * jax.random.normal(kbeta, (E,), dtype=jnp.float32)
    weight = jax.random.normal(kw, (V, E), dtype=jnp.float32) * (1.0 / jnp.sqrt(E))
    bias = 0.01 * jax.random.normal(kb, (V,), dtype=jnp.float32)

    # Pure-JAX reference (LayerNorm + Linear; dropout is identity in eval mode).
    mean = jnp.mean(x, axis=-1, keepdims=True)
    var = jnp.mean((x - mean) ** 2, axis=-1, keepdims=True)
    xn_ref = (x - mean) / jnp.sqrt(var + LN_EPS) * gamma + beta
    ref = jnp.einsum("bse,ve->bsv", xn_ref, weight) + bias

    # Default path: bf16 MXU operands (f32 accumulation) -> loose tolerance.
    logits = jax.block_until_ready(output_head(x, gamma, beta, weight, bias))
    assert logits.shape == (B, S, V)
    assert jnp.allclose(logits, ref, atol=5e-2, rtol=5e-2), (
        float(jnp.max(jnp.abs(logits - ref))))

    # Full-f32 MXU path -> tight tolerance.
    logits_f32 = jax.block_until_ready(
        output_head(x, gamma, beta, weight, bias, matmul_dtype=jnp.float32))
    assert jnp.allclose(logits_f32, ref, atol=2e-3, rtol=2e-3), (
        float(jnp.max(jnp.abs(logits_f32 - ref))))

    print("KERNEL_OK")
</pallas_src>

<mosaic_0001>
module attributes {stable_mosaic.version = 11 : i64} {
  func.func @layernorm_kernel(%arg0: i32, %arg1: memref<16x32xf32, #tpu.memory_space<vmem>>, %arg2: memref<1x32xf32, #tpu.memory_space<vmem>>, %arg3: memref<1x32xf32, #tpu.memory_space<vmem>>, %arg4: memref<16x32xbf16, #tpu.memory_space<vmem>>) attributes {dimension_semantics = [#tpu.dimension_semantics<parallel>], iteration_bounds = array<i64: 1>, scalar_prefetch = 0 : i64, scratch_operands = 0 : i64, tpu.core_type = #tpu.core_type<tc>, window_params = [{transform_indices = @transform_0, window_bounds = array<i64: 16, 32>}, {pipeline_mode = #tpu.pipeline_mode<synchronous>, transform_indices = @transform_1, window_bounds = array<i64: 1, 32>}, {pipeline_mode = #tpu.pipeline_mode<synchronous>, transform_indices = @transform_2, window_bounds = array<i64: 1, 32>}, {transform_indices = @transform_3, window_bounds = array<i64: 16, 32>}]} {
    %c0 = arith.constant 0 : index
    %c0_0 = arith.constant 0 : index
    %0 = vector.load %arg1[%c0, %c0_0] : memref<16x32xf32, #tpu.memory_space<vmem>>, vector<16x32xf32>
    %cst = arith.constant dense<0.000000e+00> : vector<16xf32>
    %1 = vector.multi_reduction <add>, %0, %cst [1] : vector<16x32xf32> to vector<16xf32>
    %2 = vector.shape_cast %1 : vector<16xf32> to vector<16x1xf32>
    %cst_1 = arith.constant 3.200000e+01 : f32
    %3 = vector.broadcast %cst_1 : f32 to vector<16x1xf32>
    %4 = arith.divf %2, %3 : vector<16x1xf32>
    %5 = arith.mulf %0, %0 : vector<16x32xf32>
    %cst_2 = arith.constant dense<0.000000e+00> : vector<16xf32>
    %6 = vector.multi_reduction <add>, %5, %cst_2 [1] : vector<16x32xf32> to vector<16xf32>
    %7 = vector.shape_cast %6 : vector<16xf32> to vector<16x1xf32>
    %cst_3 = arith.constant 3.200000e+01 : f32
    %8 = vector.broadcast %cst_3 : f32 to vector<16x1xf32>
    %9 = arith.divf %7, %8 : vector<16x1xf32>
    %10 = arith.mulf %4, %4 : vector<16x1xf32>
    %11 = arith.subf %9, %10 : vector<16x1xf32>
    %cst_4 = arith.constant 9.99999974E-6 : f32
    %12 = vector.broadcast %cst_4 : f32 to vector<16x1xf32>
    %13 = arith.addf %11, %12 : vector<16x1xf32>
    %14 = math.rsqrt %13 : vector<16x1xf32>
    %15 = vector.broadcast %4 : vector<16x1xf32> to vector<16x32xf32>
    %16 = arith.subf %0, %15 : vector<16x32xf32>
    %17 = vector.broadcast %14 : vector<16x1xf32> to vector<16x32xf32>
    %18 = arith.mulf %16, %17 : vector<16x32xf32>
    %c0_5 = arith.constant 0 : index
    %c0_6 = arith.constant 0 : index
    %19 = vector.load %arg2[%c0_5, %c0_6] : memref<1x32xf32, #tpu.memory_space<vmem>>, vector<1x32xf32>
    %20 = vector.broadcast %19 : vector<1x32xf32> to vector<16x32xf32>
    %21 = arith.mulf %18, %20 : vector<16x32xf32>
    %c0_7 = arith.constant 0 : index
    %c0_8 = arith.constant 0 : index
    %22 = vector.load %arg3[%c0_7, %c0_8] : memref<1x32xf32, #tpu.memory_space<vmem>>, vector<1x32xf32>
    %23 = vector.broadcast %22 : vector<1x32xf32> to vector<16x32xf32>
    %24 = arith.addf %21, %23 : vector<16x32xf32>
    %25 = arith.truncf %24 : vector<16x32xf32> to vector<16x32xbf16>
    %c0_9 = arith.constant 0 : index
    %c0_10 = arith.constant 0 : index
    %26 = vector.load %arg4[%c0_9, %c0_10] : memref<16x32xbf16, #tpu.memory_space<vmem>>, vector<16x32xbf16>
    tpu.vector_store %arg4[%c0_9, %c0_10], %25 {strides = array<i32>} : memref<16x32xbf16, #tpu.memory_space<vmem>>, vector<16x32xbf16>,
    return
  }
  func.func @transform_0(%arg0: i32) -> (i32, i32) {
    %c0_i32 = arith.constant 0 : i32
    %c0_i32_0 = arith.constant 0 : i32
    return %arg0, %c0_i32 : i32, i32
  }
  func.func @transform_1(%arg0: i32) -> (i32, i32) {
    %c0_i32 = arith.constant 0 : i32
    %c0_i32_0 = arith.constant 0 : i32
    %c0_i32_1 = arith.constant 0 : i32
    return %c0_i32, %c0_i32_0 : i32, i32
  }
  func.func @transform_2(%arg0: i32) -> (i32, i32) {
    %c0_i32 = arith.constant 0 : i32
    %c0_i32_0 = arith.constant 0 : i32
    %c0_i32_1 = arith.constant 0 : i32
    return %c0_i32, %c0_i32_0 : i32, i32
  }
  func.func @transform_3(%arg0: i32) -> (i32, i32) {
    %c0_i32 = arith.constant 0 : i32
    %c0_i32_0 = arith.constant 0 : i32
    return %arg0, %c0_i32 : i32, i32
  }
}

module attributes {stable_mosaic.version = 11 : i64} {
  func.func @projection_kernel(%arg0: i32, %arg1: i32, %arg2: memref<16x32xbf16, #tpu.memory_space<vmem>>, %arg3: memref<128x32xf32, #tpu.memory_space<vmem>>, %arg4: memref<1x128xf32, #tpu.memory_space<vmem>>, %arg5: memref<16x128xf32, #tpu.memory_space<vmem>>) attributes {dimension_semantics = [#tpu.dimension_semantics<parallel>, #tpu.dimension_semantics<parallel>], iteration_bounds = array<i64: 1, 1>, scalar_prefetch = 0 : i64, scratch_operands = 0 : i64, tpu.core_type = #tpu.core_type<tc>, window_params = [{transform_indices = @transform_0, window_bounds = array<i64: 16, 32>}, {transform_indices = @transform_1, window_bounds = array<i64: 128, 32>}, {transform_indices = @transform_2, window_bounds = array<i64: 1, 128>}, {transform_indices = @transform_3, window_bounds = array<i64: 16, 128>}]} {
    %c0 = arith.constant 0 : index
    %c0_0 = arith.constant 0 : index
    %0 = vector.load %arg2[%c0, %c0_0] : memref<16x32xbf16, #tpu.memory_space<vmem>>, vector<16x32xbf16>
    %c0_1 = arith.constant 0 : index
    %c0_2 = arith.constant 0 : index
    %1 = vector.load %arg3[%c0_1, %c0_2] : memref<128x32xf32, #tpu.memory_space<vmem>>, vector<128x32xf32>
    %2 = arith.truncf %1 : vector<128x32xf32> to vector<128x32xbf16>
    %cst = arith.constant dense<0.000000e+00> : vector<16x128xf32>
    %3 = tpu.matmul %0, %2, %cst {dimension_numbers = #tpu.dot_dimension_numbers<[1], [1], [0], [0], [0, 0, 1, 0], [], []>} : vector<16x32xbf16>, vector<128x32xbf16>, vector<16x128xf32> -> vector<16x128xf32>
    %c0_3 = arith.constant 0 : index
    %c0_4 = arith.constant 0 : index
    %4 = vector.load %arg4[%c0_3, %c0_4] : memref<1x128xf32, #tpu.memory_space<vmem>>, vector<1x128xf32>
    %5 = vector.broadcast %4 : vector<1x128xf32> to vector<16x128xf32>
    %6 = arith.addf %3, %5 : vector<16x128xf32>
    %c0_5 = arith.constant 0 : index
    %c0_6 = arith.constant 0 : index
    %7 = vector.load %arg5[%c0_5, %c0_6] : memref<16x128xf32, #tpu.memory_space<vmem>>, vector<16x128xf32>
    tpu.vector_store %arg5[%c0_5, %c0_6], %6 {strides = array<i32>} : memref<16x128xf32, #tpu.memory_space<vmem>>, vector<16x128xf32>,
    return
  }
  func.func @transform_0(%arg0: i32, %arg1: i32) -> (i32, i32) {
    %c0_i32 = arith.constant 0 : i32
    %c0_i32_0 = arith.constant 0 : i32
    return %arg1, %c0_i32 : i32, i32
  }
  func.func @transform_1(%arg0: i32, %arg1: i32) -> (i32, i32) {
    %c0_i32 = arith.constant 0 : i32
    %c0_i32_0 = arith.constant 0 : i32
    return %arg0, %c0_i32 : i32, i32
  }
  func.func @transform_2(%arg0: i32, %arg1: i32) -> (i32, i32) {
    %c0_i32 = arith.constant 0 : i32
    %c0_i32_0 = arith.constant 0 : i32
    return %c0_i32, %arg0 : i32, i32
  }
  func.func @transform_3(%arg0: i32, %arg1: i32) -> (i32, i32) {
    %c0_i32 = arith.constant 0 : i32
    return %arg1, %arg0 : i32, i32
  }
}

</mosaic_0001>

<bundles_post_ra>
// kernel: output_head.2
= control target key start
LH: loop header
LB: loop body
LE: loop exit
PB: predicated region body
PF: predicated region fallthrough
CT: control target
= control target key end

     0   :  { %8 = vsyncpa [#allocation3], 0  ;;  %s279_s0 = inlined_call_operand.hbm [shape: f32[16,32], index: 0, kind: input, shape index: {}]   ;;  %s280_s1 = inlined_call_operand.hbm [shape: f32[1,32], index: 1, kind: input, shape index: {}]   ;;  %s281_s2 = inlined_call_operand.hbm [shape: f32[1,32], index: 2, kind: input, shape index: {}]   ;;  %s282_s3 = inlined_call_operand.vmem [shape: bf16[16,32], index: 3, kind: output, shape index: {}]  }
   0x1   :  { %9 = vsyncpa [#allocation5], 0  ;;  %s205_s12 = smov [#allocation4]   ;;  %s206_s14 = smov [#allocation2]  }
   0x2   :  { %s28_s13 = sshll.u32 %s205_s12, 4  ;;  %s15_s15 = sshll.u32 %s206_s14, 4  ;;  %s29_s13 = int_to_ptr.vmem [resolvable:$true] %s28_s13  ;;  %s230_s15 = int_to_ptr.vmem [resolvable:$true] %s15_s15 }
   0x3   :  { %s135_s18 = scalar_lea.hbm %s280_s1, 16 }
   0x4   :  { %p136_p0 = scmp.ne.s32.totalorder %s280_s1, %s135_s18  ;;  %p139_p1 = scmp.lt.u32.totalorder %s135_s18, %s280_s1 }
   0x6   :  { %p141_p2 = pnand %p139_p1, %p136_p0 }
   0x8   :  { %144 = shalt.err (!%p141_p2)
}
   0x9   :  { %s145_s23 = scalar_lea.vmem %s29_s13, 16  ;;  %s149_s24 = scalar_lea.vmem %s29_s13, 32 }
   0xa   :  { %p146_p3 = scmp.ne.s32.totalorder %s29_s13, %s145_s23  ;;  %p150_p4 = scmp.lt.s32.totalorder %s29_s13, %s29_s13 }
   0xb   :  { %p151_p5 = scmp.lt.s32.totalorder %s149_s24, %s145_s23 }
   0xd   :  { %p152_p6 = por %p151_p5, %p150_p4 }
   0xf   :  { %p153_p7 = pnand %p152_p6, %p146_p3 }
  0x11   :  { %156 = shalt.err (!%p153_p7)
}
  0x12   :  { %31 = dma.hbm_to_vmem [thread:$0]  %s280_s1, 16, %s29_s13, [#allocation5]  }
  0x13   :  { %s157_s29 = scalar_lea.hbm %s279_s0, 256 }
  0x14   :  { %p158_p8 = scmp.ne.s32.totalorder %s279_s0, %s157_s29  ;;  %p161_p9 = scmp.lt.u32.totalorder %s157_s29, %s279_s0 }
  0x16   :  { %p163_p10 = pnand %p161_p9, %p158_p8 }
  0x18   :  { %166 = shalt.err (!%p163_p10)
}
  0x19   :  { %s167_s7 = scalar_lea.vmem %s230_s15, 256  ;;  %p172_p12 = scmp.lt.s32.totalorder %s230_s15, %s230_s15 }
  0x1a   :  { %p168_p11 = scmp.ne.s32.totalorder %s230_s15, %s167_s7  ;;  %p173_p13 = scmp.lt.s32.totalorder %s167_s7, %s167_s7 }
  0x1c   :  { %p174_p0 = por %p173_p13, %p172_p12 }
  0x1e   :  { %p175_p1 = pnand %p174_p0, %p168_p11 }
  0x20   :  { %178 = shalt.err (!%p175_p1)
}
  0x21   :  { %s207_s1 = smov 128   ;;  %s208_s8 = smov 8  }
  0x22   :  { %21 = dma.hbm_to_vmem [thread:$0]  %s279_s0, 256, %s230_s15, [#allocation3], %s207_s1, %s207_s1, %s208_s8  }
  0x23   :  { %s209_s11 = smov [#allocation6]   ;;  %s179_s16 = scalar_lea.hbm %s281_s2, 16 }
  0x24   :  { %s38_s12 = sshll.u32 %s209_s11, 4  ;;  %p180_p2 = scmp.ne.s32.totalorder %s281_s2, %s179_s16  ;;  %s39_s12 = int_to_ptr.vmem [resolvable:$true] %s38_s12 }
  0x25   :  { %p183_p3 = scmp.lt.u32.totalorder %s179_s16, %s281_s2 }
  0x27   :  { %p185_p4 = pnand %p183_p3, %p180_p2 }
  0x29   :  { %188 = shalt.err (!%p185_p4)
}
  0x2a   :  { %s189_s21 = scalar_lea.vmem %s39_s12, 16  ;;  %s193_s0 = scalar_lea.vmem %s39_s12, 32 }
  0x2b   :  { %p190_p5 = scmp.ne.s32.totalorder %s39_s12, %s189_s21  ;;  %p194_p6 = scmp.lt.s32.totalorder %s39_s12, %s39_s12 }
  0x2c   :  { %p195_p7 = scmp.lt.s32.totalorder %s193_s0, %s189_s21 }
  0x2e   :  { %p196_p8 = por %p195_p7, %p194_p6 }
  0x30   :  { %p197_p9 = pnand %p196_p8, %p190_p5 }
  0x32   :  { %200 = shalt.err (!%p197_p9)
}
  0x33   :  { %41 = dma.hbm_to_vmem [thread:$0]  %s281_s2, 16, %s39_s12, [#allocation5]  }
  0x34   :  { %201 = dma.done.wait [#allocation3], 256  }
  0x35   :  { %202 = vsyncadd [#allocation3], 4294967040 }
  0x36   :  { %203 = dma.done.wait [#allocation5], 32  }
  0x37   :  { %204 = vsyncadd [#allocation5], 4294967264  ;;  %vm53_vm0 = vcmask 261120   ;;  %v51_v0 = vld [vmem:[#allocation2] sm:$0xff]  ;;  %v52_v1 = vld [vmem:[#allocation2 + $0x8] sm:$0xff]  ;;  %vm111_vm1 = vcmask 257024  }
  0x38   :  { %v54_v2 = vsel %vm53_vm0, %v51_v0, 0.0  ;;  %v63_v3 = vmul.f32 %v51_v0, %v51_v0  ;;  %v64_v4 = vmul.f32 %v52_v1, %v52_v1  ;;  %v57_v6 = vsel %vm53_vm0, %v52_v1, 0.0  ;;  %v120_v24 = vld [vmem:[#allocation4] ss:$0 sm:$0xff]  ;;  %v121_v26 = vld [vmem:[#allocation6] ss:$0 sm:$0xff] }
  0x39   :  { %55 = vadd.xlane.f32.xlu0 %v54_v2 }
  0x3a   :  { %v65_v5 = vsel %vm53_vm0, %v63_v3, 0.0  ;;  %v68_v7 = vsel %vm53_vm0, %v64_v4, 0.0 }
  0x3b   :  { %66 = vadd.xlane.f32.xlu1 %v65_v5 }
  0x3d   :  { %58 = vadd.xlane.f32.xlu0 %v57_v6 }
  0x3f   :  { %69 = vadd.xlane.f32.xlu1 %v68_v7 }
  0xc6   :  { %v56_v8 = vpop.xlane.xlu0 %55 }
  0xc7   :  { %v61_v9 = vmul.f32 0.03125, %v56_v8 }
  0xc8   :  { %v67_v10 = vpop.xlane.xlu1 %66 }
  0xc9   :  { %v73_v11 = vmul.f32 %v61_v9, %v61_v9  ;;  %v71_v12 = vmul.f32 0.03125, %v67_v10  ;;  %v81_v22 = vsub.f32 %v51_v0, %v61_v9 }
  0xca   :  { %v59_v13 = vpop.xlane.xlu0 %58 }
  0xcb   :  { %v75_v14 = vsub.f32 %v71_v12, %v73_v11  ;;  %v62_v15 = vmul.f32 0.03125, %v59_v13 }
  0xcc   :  { %v70_v16 = vpop.xlane.xlu1 %69 }
  0xcd   :  { %v77_v17 = vadd.f32 1e-05, %v75_v14  ;;  %v74_v18 = vmul.f32 %v62_v15, %v62_v15  ;;  %v72_v19 = vmul.f32 0.03125, %v70_v16  ;;  %v82_v28 = vsub.f32 %v52_v1, %v62_v15 }
  0xcf   :  { %131 = vrsqrt.f32 %v77_v17  ;;  %v76_v20 = vsub.f32 %v72_v19, %v74_v18 }
  0xd1   :  { %v78_v21 = vadd.f32 1e-05, %v76_v20 }
  0xd3   :  { %133 = vrsqrt.f32 %v78_v21 }
  0xd9   :  { %v132_v23 = vpop.eup %131 }
  0xda   :  { %v83_v25 = vmul.f32 %v132_v23, %v81_v22 }
  0xdc   :  { %v92_v27 = vmul.f32 %v120_v24, %v83_v25 }
  0xdd   :  { %v134_v29 = vpop.eup %133 }
  0xde   :  { %v101_v30 = vadd.f32 %v121_v26, %v92_v27  ;;  %v84_v31 = vmul.f32 %v134_v29, %v82_v28 }
  0xe0   :  { %v124_v32 = vpack.c.bf16 %v101_v30, %v101_v30  ;;  %v93_v33 = vmul.f32 %v120_v24, %v84_v31 }
  0xe2   :  { %112 = vst.msk [vmem:[%s282_s3] sm:$0xf] %vm111_vm1, %v124_v32  ;;  %v102_v34 = vadd.f32 %v121_v26, %v93_v33 }
  0xe4   :  { %v125_v35 = vpack.c.bf16 %v102_v34, %v102_v34 }
  0xe6   :  { %113 = vst.msk [vmem:[%s282_s3 + $0x4] sm:$0xf] %vm111_vm1, %v125_v35 }
  0xe7   :  { %118 = vsyncpa [#allocation3], 1 }
  0xe8   :  { %119 = vsyncpa [#allocation5], 1 }

// kernel: output_head.3
= control target key start
LH: loop header
LB: loop body
LE: loop exit
PB: predicated region body
PF: predicated region fallthrough
CT: control target
= control target key end

     0   :  { %vm54_vm0 = vcmask 261120   ;;  %v203_v2 = vmov 0.0   ;;  %vm204_vm1 = vmmov 0   ;;  %s303_s0 = inlined_call_operand.vmem [shape: bf16[16,32], index: 0, kind: input, shape index: {}]   ;;  %s304_s1 = inlined_call_operand.vmem [shape: f32[128,32], index: 1, kind: input, shape index: {}]   ;;  %s305_s2 = inlined_call_operand.vmem [shape: f32[1,128], index: 2, kind: input, shape index: {}]   ;;  %s306_s3 = inlined_call_operand.hbm [shape: f32[16,128], index: 3, kind: output, shape index: {}]  }
   0x1   :  { %v18_v0 = vld [vmem:[%s304_s1] sm:$0xff]  ;;  %v19_v1 = vld [vmem:[%s304_s1 + $0x8] sm:$0xff]  ;;  %153 = vmatprep.subr.bf16.mxu0 %v203_v2  ;;  %169 = vmatprep.mubr.msk.bf16.mxu0 %vm204_vm1, %v203_v2  ;;  %v20_v4 = vld [vmem:[%s304_s1 + $0x10] sm:$0xff] }
   0x2   :  { %v34_v3 = vpack.c.bf16 %v19_v1, %v18_v0  ;;  %v21_v5 = vld [vmem:[%s304_s1 + $0x18] sm:$0xff] }
   0x3   :  { %v35_v7 = vpack.c.bf16 %v21_v5, %v20_v4 }
   0x4   :  { %v59_v6 = vsel %vm54_vm0, %v34_v3, 0 }
   0x5   :  { %154 = vmatpush3.bf16.xpose.msra.mxu0 %v59_v6 }
   0x6   :  { %155 = vmatprep.subr.bf16.mxu0 %v203_v2 }
   0x7   :  { %8 = vsyncpa [#allocation3], 0  ;;  %v62_v8 = vsel %vm54_vm0, %v35_v7, 0  ;;  %v22_v9 = vld [vmem:[%s304_s1 + $0x20] sm:$0xff]  ;;  %v23_v10 = vld [vmem:[%s304_s1 + $0x28] sm:$0xff]  ;;  %s205_s21 = smov [#allocation2]  }
   0x8   :  { %v36_v11 = vpack.c.bf16 %v23_v10, %v22_v9  ;;  %v24_v13 = vld [vmem:[%s304_s1 + $0x30] sm:$0xff]  ;;  %v25_v14 = vld [vmem:[%s304_s1 + $0x38] sm:$0xff]  ;;  %v26_v17 = vld [vmem:[%s304_s1 + $0x40] sm:$0xff]  ;;  %s130_s22 = sshll.u32 %s205_s21, 4  ;;  %s131_s22 = int_to_ptr.vmem [resolvable:$true] %s130_s22 }
   0x9   :  { %v37_v15 = vpack.c.bf16 %v25_v14, %v24_v13  ;;  %v27_v18 = vld [vmem:[%s304_s1 + $0x48] sm:$0xff]  ;;  %v28_v21 = vld [vmem:[%s304_s1 + $0x50] sm:$0xff]  ;;  %v29_v22 = vld [vmem:[%s304_s1 + $0x58] sm:$0xff]  ;;  %p184_p1 = scmp.lt.s32.totalorder %s131_s22, %s131_s22 }
   0xa   :  { %v65_v12 = vsel %vm54_vm0, %v36_v11, 0  ;;  %v38_v19 = vpack.c.bf16 %v27_v18, %v26_v17  ;;  %v39_v23 = vpack.c.bf16 %v29_v22, %v28_v21  ;;  %v30_v25 = vld [vmem:[%s304_s1 + $0x60] sm:$0xff]  ;;  %v31_v26 = vld [vmem:[%s304_s1 + $0x68] sm:$0xff]  ;;  %v32_v29 = vld [vmem:[%s304_s1 + $0x70] sm:$0xff] }
   0xb   :  { %v68_v16 = vsel %vm54_vm0, %v37_v15, 0  ;;  %v40_v27 = vpack.c.bf16 %v31_v26, %v30_v25  ;;  %v33_v30 = vld [vmem:[%s304_s1 + $0x78] sm:$0xff]  ;;  %v178_v33 = vld [vmem:[%s303_s0] sm:$0xff]   ;;  %s179_s1 = scalar_lea.vmem %s131_s22, 256 }
   0xc   :  { %v71_v20 = vsel %vm54_vm0, %v38_v19, 0  ;;  %v74_v24 = vsel %vm54_vm0, %v39_v23, 0  ;;  %v41_v31 = vpack.c.bf16 %v33_v30, %v32_v29  ;;  %v141_v34 = vld [vmem:[%s305_s2] ss:$0 sm:$0xff]  ;;  %p180_p0 = scmp.ne.s32.totalorder %s131_s22, %s179_s1  ;;  %p185_p2 = scmp.lt.s32.totalorder %s179_s1, %s179_s1 }
   0xd   :  { %156 = vmatpush3.bf16.xpose.msra.mxu0 %v62_v8  ;;  %v77_v28 = vsel %vm54_vm0, %v40_v27, 0 }
   0xe   :  { %157 = vmatprep.subr.bf16.mxu0 %v203_v2  ;;  %v80_v32 = vsel %vm54_vm0, %v41_v31, 0  ;;  %p186_p3 = por %p185_p2, %p184_p1 }
  0x10   :  { %p187_p4 = pnand %p186_p3, %p180_p0 }
  0x15   :  { %158 = vmatpush3.bf16.xpose.msra.mxu0 %v65_v12 }
  0x16   :  { %159 = vmatprep.subr.bf16.mxu0 %v203_v2 }
  0x1d   :  { %160 = vmatpush3.bf16.xpose.msra.mxu0 %v68_v16 }
  0x1e   :  { %161 = vmatprep.subr.bf16.mxu0 %v203_v2 }
  0x25   :  { %162 = vmatpush3.bf16.xpose.msra.mxu0 %v71_v20 }
  0x26   :  { %163 = vmatprep.subr.bf16.mxu0 %v203_v2 }
  0x2d   :  { %164 = vmatpush3.bf16.xpose.msra.mxu0 %v74_v24 }
  0x2e   :  { %165 = vmatprep.subr.bf16.mxu0 %v203_v2 }
  0x35   :  { %166 = vmatpush3.bf16.xpose.msra.mxu0 %v77_v28 }
  0x36   :  { %167 = vmatprep.subr.bf16.mxu0 %v203_v2 }
  0x3d   :  { %168 = vmatpush3.bf16.xpose.msra.mxu0 %v80_v32 }
  0x44   :  { %170 = vmatmul.mubr.msk.bf16.vlgmr.msra.gmra.mrb[0].mxu0 %vm54_vm0, %v178_v33 }
 0x117   :  { %v116_v35 = vpop.f32.mrb[0].mxu0 }
 0x118   :  { %v117_v36 = vadd.f32 %v141_v34, %v116_v35  ;;  %v171_v37 = vpop.f32.mrb[1].mxu0 }
 0x119   :  { %v119_v38 = vpop.f32.mrb[2].mxu0 }
 0x11a   :  { %123 = vst [vmem:[#allocation2] sm:$0xff] %v117_v36  ;;  %v120_v39 = vadd.f32 %v141_v34, %v119_v38  ;;  %v172_v40 = vpop.f32.mrb[3].mxu0 }
 0x11c   :  { %124 = vst [vmem:[#allocation2 + $0x8] sm:$0xff] %v120_v39 }
 0x11d   :  { %190 = shalt.err (!%p187_p4)
}
 0x11e   :  { %s191_s23 = scalar_lea.hbm %s306_s3, 256 }
 0x11f   :  { %p192_p5 = scmp.ne.s32.totalorder %s306_s3, %s191_s23  ;;  %p195_p6 = scmp.lt.u32.totalorder %s191_s23, %s306_s3 }
 0x121   :  { %p197_p7 = pnand %p195_p6, %p192_p5 }
 0x123   :  { %200 = shalt.err (!%p197_p7)
}
 0x124   :  { %s206_s28 = smov 128   ;;  %s207_s29 = smov 8  }
 0x125   :  { %136 = dma.vmem_to_hbm [thread:$0]  %s131_s22, 256, %s306_s3, [#allocation3], %s206_s28, %s206_s28, %s207_s29  }
 0x126   :  { %201 = dma.done.wait [#allocation3], 256  }
 0x127   :  { %202 = vsyncadd [#allocation3], 4294967040 }
 0x128   :  { %140 = vsyncpa [#allocation3], 1 }

</bundles_post_ra>
